<compile_context>
chip_gen: v6e
topology: v6e:2x2x1
jax: 0.10.0
libtpu: 0.0.40
codegen_flags: <defaults>
</compile_context>

<pallas_src>
import functools

import jax
import jax.numpy as jnp
from jax import lax
from jax.experimental import pallas as pl
from jax.experimental.pallas import tpu as pltpu

LN_EPS = 1e-5          # torch.nn.LayerNorm default
HIDDEN = 10            # fixed by the module definition
LANE = 128
VMEM_LIMIT_BYTES = 32 * 1024 * 1024     # explicit: v5e default scoped is only 16 MiB
TILE_VMEM_BUDGET = 24 * 1024 * 1024     # leave headroom for resident weights/out bufs
PALLAS_MIN_BYTES = 256 * 1024           # below this, fused XLA wins (launch overhead)


# ----------------------------------------------------------------------------- kernel
def toy_model_kernel(x_ref, w1t_ref, w2t_ref, bias_ref, o_ref):
    # fc1 (no bias) + ReLU.  x tile: [TILE_B, in_features] in compute dtype
    # (bf16 by default); accumulate in f32 on the MXU.
    h = jnp.dot(x_ref[...], w1t_ref[...], preferred_element_type=jnp.float32)
    h = jnp.maximum(h, 0.0)                                   # [TILE_B, 10], f32

    # LayerNorm over last dim (biased variance, like torch).  Two-pass form kept
    # for numerical safety (feedback: one-pass saving is negligible here).
    mean = jnp.mean(h, axis=-1, keepdims=True)
    cent = h - mean
    var = jnp.mean(cent * cent, axis=-1, keepdims=True)
    h_norm = cent * lax.rsqrt(var + LN_EPS)                   # f32

    # fc2 with LayerNorm affine folded in:
    #   ((h_norm*gamma) + beta) @ w2.T == h_norm @ (w2*gamma).T + (w2 @ beta)
    # w2t_ref: [10, N_PAD] lane-dense zero-padded; bias_ref: [1, N_PAD] f32.
    o_ref[...] = (
        jnp.dot(h_norm.astype(w2t_ref.dtype), w2t_ref[...],
                preferred_element_type=jnp.float32)
        + bias_ref[...]
    )


# ------------------------------------------------------------------------- param prep
def prepare_params(w1, gamma, beta, w2, compute_dtype=jnp.bfloat16):
    """One-time weight prep: transpose, LN-affine fold, lane padding, dtype cast.

    compute_dtype is the MXU feed dtype for x / w1^T / folded w2^T (bf16 default
    per perf feedback); folded bias and all in-kernel LN math stay f32.
    """
    out_features = w2.shape[0]
    n_pad = max(LANE, ((out_features + LANE - 1) // LANE) * LANE)

    w1t = jnp.asarray(w1).T.astype(compute_dtype)                        # [in, 10]

    w2_f32 = jnp.asarray(w2).astype(jnp.float32)                         # [out, 10]
    gamma_f32 = jnp.asarray(gamma).astype(jnp.float32)
    beta_f32 = jnp.asarray(beta).astype(jnp.float32)

    w2_eff = w2_f32 * gamma_f32[None, :]                                 # [out, 10]
    bias_eff = w2_f32 @ beta_f32                                         # [out]

    w2t_pad = (jnp.zeros((HIDDEN, n_pad), compute_dtype)
               .at[:, :out_features].set(w2_eff.T.astype(compute_dtype)))
    bias_pad = (jnp.zeros((1, n_pad), jnp.float32)
                .at[0, :out_features].set(bias_eff))
    return w1t, w2t_pad, bias_pad, out_features


# -------------------------------------------------------------------------- tile pick
def _pick_tile_b(B, in_features, n_pad, x_bytes, out_bytes,
                 budget_bytes=TILE_VMEM_BUDGET, cap=1024):
    """VMEM-budget-aware batch tile: double-buffered x tile + out tile must fit."""
    per_row = 2 * (in_features * x_bytes + n_pad * out_bytes)
    tile = max(8, (budget_bytes // per_row) // 8 * 8)
    tile = min(tile, cap)
    if B >= 16:
        # Guarantee >= 2 grid steps so the "parallel" batch axis can shard across
        # both v7x TensorCores (harmless single-TC on v5e/v6e).
        half = (((B + 1) // 2) + 7) // 8 * 8
        tile = min(tile, half)
    if tile >= B:
        return B                      # single full-extent block
    return tile


# ---------------------------------------------------------------------------- wrapper
@functools.partial(jax.jit, static_argnames=("out_features",))
def _toy_model_call(x, w1t, w2t_pad, bias_pad, out_features):
    B, in_features = x.shape
    n_pad = w2t_pad.shape[1]
    compute_dtype = w1t.dtype
    x = x.astype(compute_dtype)       # bf16 halves the dominant HBM read stream

    x_bytes = compute_dtype.itemsize
    out_bytes = 4                     # f32 output (keeps module semantics/accuracy)
    tile_b = _pick_tile_b(B, in_features, n_pad, x_bytes, out_bytes)
    grid = (pl.cdiv(B, tile_b),)

    cost = pl.CostEstimate(
        flops=2 * B * HIDDEN * (in_features + out_features),
        transcendentals=B,            # one rsqrt per row
        bytes_accessed=(B * in_features * x_bytes
                        + in_features * HIDDEN * x_bytes
                        + HIDDEN * n_pad * w2t_pad.dtype.itemsize
                        + n_pad * 4
                        + B * n_pad * out_bytes),
    )

    out_padded = pl.pallas_call(
        toy_model_kernel,
        out_shape=jax.ShapeDtypeStruct((B, n_pad), jnp.float32),
        grid=grid,
        in_specs=[
            pl.BlockSpec((tile_b, in_features), lambda i: (i, 0)),   # x tiles
            pl.BlockSpec((in_features, HIDDEN), lambda i: (0, 0)),   # w1^T resident
            pl.BlockSpec((HIDDEN, n_pad), lambda i: (0, 0)),         # (w2*gamma)^T res.
            pl.BlockSpec((1, n_pad), lambda i: (0, 0)),              # folded bias res.
        ],
        out_specs=pl.BlockSpec((tile_b, n_pad), lambda i: (i, 0)),   # lane-dense out
        compiler_params=pltpu.CompilerParams(
            dimension_semantics=("parallel",),      # shard batch across TCs (v7x)
            vmem_limit_bytes=VMEM_LIMIT_BYTES,      # explicit; safe on v7x 64 MiB
        ),
        cost_estimate=cost,
    )(x, w1t, w2t_pad, bias_pad)

    if n_pad == out_features:
        return out_padded             # no copy when out_features % 128 == 0
    # TODO(synk): downstream consumers should prefer the padded lane-dense buffer
    # to avoid this extra HBM read/write; kept here to match module semantics.
    return out_padded[:, :out_features]


def _toy_model_xla(x, w1t, w2t_pad, bias_pad, out_features):
    """Fused-XLA fallback for tiny problems (same folded params)."""
    h = jnp.maximum(x.astype(jnp.float32) @ w1t.astype(jnp.float32), 0.0)
    mean = jnp.mean(h, axis=-1, keepdims=True)
    cent = h - mean
    var = jnp.mean(cent * cent, axis=-1, keepdims=True)
    h_norm = cent * lax.rsqrt(var + LN_EPS)
    y = h_norm @ w2t_pad.astype(jnp.float32) + bias_pad
    return y[:, :out_features]


def toy_model_forward(x, params, force_pallas=False):
    w1t, w2t_pad, bias_pad, out_features = params
    if not force_pallas and x.shape[0] * x.shape[1] * x.dtype.itemsize < PALLAS_MIN_BYTES:
        return _toy_model_xla(x, w1t, w2t_pad, bias_pad, out_features)
    return _toy_model_call(x, w1t, w2t_pad, bias_pad, out_features)


# -------------------------------------------------------------------------- reference
def toy_model_ref(x, w1, gamma, beta, w2):
    h = jnp.maximum(x @ w1.T, 0.0)
    mean = jnp.mean(h, axis=-1, keepdims=True)
    var = jnp.mean((h - mean) ** 2, axis=-1, keepdims=True)
    y = (h - mean) / jnp.sqrt(var + LN_EPS) * gamma + beta
    return y @ w2.T


# --------------------------------------------------------------------------------- demo
if __name__ == "__main__":
    batch = 8
    in_features = 32
    out_features = 16

    key = jax.random.PRNGKey(0)
    kx, k1, k2, kg, kb = jax.random.split(key, 5)

    x = jax.random.normal(kx, (batch, in_features), dtype=jnp.float32)
    # nn.Linear layout: [out, in]
    w1 = jax.random.normal(k1, (HIDDEN, in_features), dtype=jnp.float32) * 0.1
    w2 = jax.random.normal(k2, (out_features, HIDDEN), dtype=jnp.float32) * 0.1
    # Non-trivial LayerNorm affine to exercise the fold.
    gamma = 1.0 + 0.1 * jax.random.normal(kg, (HIDDEN,), dtype=jnp.float32)
    beta = 0.05 * jax.random.normal(kb, (HIDDEN,), dtype=jnp.float32)

    ref = toy_model_ref(x, w1, gamma, beta, w2)

    # f32 MXU feed: bitwise-comparable to the math spec (1e-5 tolerance).
    params_f32 = prepare_params(w1, gamma, beta, w2, compute_dtype=jnp.float32)
    out_f32 = jax.block_until_ready(toy_model_forward(x, params_f32, force_pallas=True))
    assert out_f32.shape == (batch, out_features)
    assert jnp.allclose(out_f32, ref, atol=1e-5, rtol=1e-5), \
        float(jnp.max(jnp.abs(out_f32 - ref)))

    # bf16 MXU feed (default, perf path): matmul operands in bf16, LN math f32.
    params_bf16 = prepare_params(w1, gamma, beta, w2)
    out_bf16 = jax.block_until_ready(toy_model_forward(x, params_bf16, force_pallas=True))
    assert out_bf16.shape == (batch, out_features)
    assert jnp.allclose(out_bf16, ref, atol=2e-2, rtol=2e-2), \
        float(jnp.max(jnp.abs(out_bf16 - ref)))

    print("KERNEL_OK")
</pallas_src>

<mosaic_0001>
module attributes {stable_mosaic.version = 11 : i64} {
  func.func @toy_model_kernel(%arg0: i32, %arg1: memref<8x32xf32, #tpu.memory_space<vmem>>, %arg2: memref<32x10xf32, #tpu.memory_space<vmem>>, %arg3: memref<10x128xf32, #tpu.memory_space<vmem>>, %arg4: memref<1x128xf32, #tpu.memory_space<vmem>>, %arg5: memref<8x128xf32, #tpu.memory_space<vmem>>) attributes {dimension_semantics = [#tpu.dimension_semantics<parallel>], iteration_bounds = array<i64: 1>, scalar_prefetch = 0 : i64, scratch_operands = 0 : i64, tpu.core_type = #tpu.core_type<tc>, window_params = [{transform_indices = @transform_0, window_bounds = array<i64: 8, 32>}, {pipeline_mode = #tpu.pipeline_mode<synchronous>, transform_indices = @transform_1, window_bounds = array<i64: 32, 10>}, {pipeline_mode = #tpu.pipeline_mode<synchronous>, transform_indices = @transform_2, window_bounds = array<i64: 10, 128>}, {pipeline_mode = #tpu.pipeline_mode<synchronous>, transform_indices = @transform_3, window_bounds = array<i64: 1, 128>}, {transform_indices = @transform_4, window_bounds = array<i64: 8, 128>}]} {
    %c0 = arith.constant 0 : index
    %c0_0 = arith.constant 0 : index
    %0 = vector.load %arg1[%c0, %c0_0] : memref<8x32xf32, #tpu.memory_space<vmem>>, vector<8x32xf32>
    %c0_1 = arith.constant 0 : index
    %c0_2 = arith.constant 0 : index
    %1 = vector.load %arg2[%c0_1, %c0_2] : memref<32x10xf32, #tpu.memory_space<vmem>>, vector<32x10xf32>
    %cst = arith.constant dense<0.000000e+00> : vector<8x10xf32>
    %2 = tpu.matmul %0, %1, %cst {dimension_numbers = #tpu.dot_dimension_numbers<[1], [0], [0], [1], [0, 0, 1, 1], [], []>} : vector<8x32xf32>, vector<32x10xf32>, vector<8x10xf32> -> vector<8x10xf32>
    %cst_3 = arith.constant 0.000000e+00 : f32
    %3 = vector.broadcast %cst_3 : f32 to vector<8x10xf32>
    %4 = arith.maximumf %2, %3 : vector<8x10xf32>
    %cst_4 = arith.constant dense<0.000000e+00> : vector<8xf32>
    %5 = vector.multi_reduction <add>, %4, %cst_4 [1] : vector<8x10xf32> to vector<8xf32>
    %6 = vector.shape_cast %5 : vector<8xf32> to vector<8x1xf32>
    %cst_5 = arith.constant 1.000000e+01 : f32
    %7 = vector.broadcast %cst_5 : f32 to vector<8x1xf32>
    %8 = arith.divf %6, %7 : vector<8x1xf32>
    %9 = vector.broadcast %8 : vector<8x1xf32> to vector<8x10xf32>
    %10 = arith.subf %4, %9 : vector<8x10xf32>
    %11 = arith.mulf %10, %10 : vector<8x10xf32>
    %cst_6 = arith.constant dense<0.000000e+00> : vector<8xf32>
    %12 = vector.multi_reduction <add>, %11, %cst_6 [1] : vector<8x10xf32> to vector<8xf32>
    %13 = vector.shape_cast %12 : vector<8xf32> to vector<8x1xf32>
    %cst_7 = arith.constant 1.000000e+01 : f32
    %14 = vector.broadcast %cst_7 : f32 to vector<8x1xf32>
    %15 = arith.divf %13, %14 : vector<8x1xf32>
    %cst_8 = arith.constant 9.99999974E-6 : f32
    %16 = vector.broadcast %cst_8 : f32 to vector<8x1xf32>
    %17 = arith.addf %15, %16 : vector<8x1xf32>
    %18 = math.rsqrt %17 : vector<8x1xf32>
    %19 = vector.broadcast %18 : vector<8x1xf32> to vector<8x10xf32>
    %20 = arith.mulf %10, %19 : vector<8x10xf32>
    %c0_9 = arith.constant 0 : index
    %c0_10 = arith.constant 0 : index
    %21 = vector.load %arg3[%c0_9, %c0_10] : memref<10x128xf32, #tpu.memory_space<vmem>>, vector<10x128xf32>
    %cst_11 = arith.constant dense<0.000000e+00> : vector<8x128xf32>
    %22 = tpu.matmul %20, %21, %cst_11 {dimension_numbers = #tpu.dot_dimension_numbers<[1], [0], [0], [1], [0, 0, 1, 1], [], []>} : vector<8x10xf32>, vector<10x128xf32>, vector<8x128xf32> -> vector<8x128xf32>
    %c0_12 = arith.constant 0 : index
    %c0_13 = arith.constant 0 : index
    %23 = vector.load %arg4[%c0_12, %c0_13] : memref<1x128xf32, #tpu.memory_space<vmem>>, vector<1x128xf32>
    %24 = vector.broadcast %23 : vector<1x128xf32> to vector<8x128xf32>
    %25 = arith.addf %22, %24 : vector<8x128xf32>
    %c0_14 = arith.constant 0 : index
    %c0_15 = arith.constant 0 : index
    %26 = vector.load %arg5[%c0_14, %c0_15] : memref<8x128xf32, #tpu.memory_space<vmem>>, vector<8x128xf32>
    tpu.vector_store %arg5[%c0_14, %c0_15], %25 {strides = array<i32>} : memref<8x128xf32, #tpu.memory_space<vmem>>, vector<8x128xf32>,
    return
  }
  func.func @transform_0(%arg0: i32) -> (i32, i32) {
    %c0_i32 = arith.constant 0 : i32
    %c0_i32_0 = arith.constant 0 : i32
    return %arg0, %c0_i32 : i32, i32
  }
  func.func @transform_1(%arg0: i32) -> (i32, i32) {
    %c0_i32 = arith.constant 0 : i32
    %c0_i32_0 = arith.constant 0 : i32
    %c0_i32_1 = arith.constant 0 : i32
    return %c0_i32, %c0_i32_0 : i32, i32
  }
  func.func @transform_2(%arg0: i32) -> (i32, i32) {
    %c0_i32 = arith.constant 0 : i32
    %c0_i32_0 = arith.constant 0 : i32
    %c0_i32_1 = arith.constant 0 : i32
    return %c0_i32, %c0_i32_0 : i32, i32
  }
  func.func @transform_3(%arg0: i32) -> (i32, i32) {
    %c0_i32 = arith.constant 0 : i32
    %c0_i32_0 = arith.constant 0 : i32
    %c0_i32_1 = arith.constant 0 : i32
    return %c0_i32, %c0_i32_0 : i32, i32
  }
  func.func @transform_4(%arg0: i32) -> (i32, i32) {
    %c0_i32 = arith.constant 0 : i32
    %c0_i32_0 = arith.constant 0 : i32
    return %arg0, %c0_i32 : i32, i32
  }
}

</mosaic_0001>

<bundles_post_ra>
// kernel: _toy_model_call.1
= control target key start
LH: loop header
LB: loop body
LE: loop exit
PB: predicated region body
PF: predicated region fallthrough
CT: control target
= control target key end

     0   :  { %v271_v1 = vmov 0.0   ;;  %vm272_vm0 = vmmov 0   ;;  %s329_s0 = inlined_call_operand.vmem [shape: f32[8,32], index: 0, kind: input, shape index: {}]   ;;  %s330_s1 = inlined_call_operand.vmem [shape: f32[32,10], index: 1, kind: input, shape index: {}]   ;;  %s331_s2 = inlined_call_operand.vmem [shape: f32[10,128], index: 2, kind: input, shape index: {}]   ;;  %s332_s3 = inlined_call_operand.vmem [shape: f32[1,128], index: 3, kind: input, shape index: {}]   ;;  %s333_s4 = inlined_call_operand.hbm [shape: f32[8,128], index: 4, kind: output, shape index: {}]  }
   0x1   :  { %v22_v0 = vld [vmem:[%s330_s1 + $0x18] sm:$0xff]  ;;  %226 = vmatprep.subr.mxu0 %v271_v1  ;;  %v21_v2 = vld [vmem:[%s330_s1 + $0x10] sm:$0xff]  ;;  %234 = vmatprep.mubr.msk.f32.mxu0 %vm272_vm0, %v271_v1 }
   0x2   :  { %9 = vsyncpa [#allocation3], 0  ;;  %227 = vmatpush3.msra.mxu0 %v22_v0  ;;  %237 = vmatprep.subr.mxu1 %v271_v1  ;;  %v20_v3 = vld [vmem:[%s330_s1 + $0x8] sm:$0xff]  ;;  %v19_v4 = vld [vmem:[%s330_s1] sm:$0xff]  ;;  %vm23_vm1 = vcmask 261120   ;;  %vm98_vm2 = vcmask 80896  }
   0x3   :  { %228 = vmatprep.subr.mxu0 %v271_v1  ;;  %241 = vmatprep.mubr.msk.f32.mxu1 %vm272_vm0, %v271_v1  ;;  %v18_v5 = vld [vmem:[%s329_s0] sm:$0xff]  ;;  %v114_v15 = vld [vmem:[%s331_s2 + $0x8] sm:$0x3]  ;;  %vm125_vm3 = vcmask 1041408   ;;  %s273_s29 = smov [#allocation2]  }
   0x4   :  { %229 = vmatpush3.msra.mxu0 %v21_v2  ;;  %v113_v16 = vld [vmem:[%s331_s2] sm:$0xff]  ;;  %238 = vmatpush3.msk.msra.mxu1 %vm125_vm3, %v114_v15  ;;  %s206_s30 = sshll.u32 %s273_s29, 4  ;;  %s207_s30 = int_to_ptr.vmem [resolvable:$true] %s206_s30 }
   0x5   :  { %230 = vmatprep.subr.mxu0 %v271_v1  ;;  %239 = vmatprep.subr.mxu1 %v271_v1  ;;  %v215_v22 = vld [vmem:[%s332_s3] ss:$0 sm:$0xff]  ;;  %s249_s2 = scalar_lea.vmem %s207_s30, 128  ;;  %p254_p1 = scmp.lt.s32.totalorder %s207_s30, %s207_s30 }
   0x6   :  { %231 = vmatpush3.msra.mxu0 %v20_v3  ;;  %240 = vmatpush3.msra.mxu1 %v113_v16  ;;  %p250_p0 = scmp.ne.s32.totalorder %s207_s30, %s249_s2  ;;  %p255_p2 = scmp.lt.s32.totalorder %s249_s2, %s249_s2 }
   0x7   :  { %232 = vmatprep.subr.mxu0 %v271_v1 }
   0x8   :  { %233 = vmatpush3.msra.mxu0 %v19_v4  ;;  %p256_p3 = por %p255_p2, %p254_p1 }
   0x9   :  { %235 = vmatmul.mubr.msk.f32.vlgmr.msra.gmra.mxu0 %vm23_vm1, %v18_v5 }
   0xa   :  { %p257_p4 = pnand %p256_p3, %p250_p0 }
  0xc9   :  { %v93_v6 = vpop.f32.mrf.mxu0 }
  0xca   :  { %v97_v7 = vmax.f32 %v93_v6, 0.0 }
  0xcb   :  { %v236_v8 = vpop.f32.mrf.mxu0 }
  0xcc   :  { %v99_v9 = vsel %vm98_vm2, %v97_v7, 0.0 }
  0xcd   :  { %100 = vadd.xlane.f32.xlu0 %v99_v9 }
 0x156   :  { %v101_v10 = vpop.xlane.xlu0 %100 }
 0x157   :  { %v103_v11 = vmul.f32 0.1, %v101_v10 }
 0x159   :  { %v104_v12 = vsub.f32 %v97_v7, %v103_v11 }
 0x15b   :  { %v105_v13 = vmul.f32 %v104_v12, %v104_v12 }
 0x15d   :  { %v106_v14 = vsel %vm98_vm2, %v105_v13, 0.0 }
 0x15e   :  { %107 = vadd.xlane.f32.xlu0 %v106_v14 }
 0x1e7   :  { %v108_v17 = vpop.xlane.xlu0 %107 }
 0x1e8   :  { %v109_v18 = vmul.f32 0.1, %v108_v17 }
 0x1ea   :  { %v110_v19 = vadd.f32 1e-05, %v109_v18 }
 0x1ec   :  { %247 = vrsqrt.f32 %v110_v19 }
 0x1f9   :  { %v248_v20 = vpop.eup %247 }
 0x1fa   :  { %v112_v21 = vmul.f32 %v248_v20, %v104_v12 }
 0x1fc   :  { %242 = vmatmul.mubr.msk.f32.vlgmr.msra.gmra.mxu1 %vm98_vm2, %v112_v21 }
 0x2bc   :  { %v195_v23 = vpop.f32.mrf.mxu1 }
 0x2bd   :  { %v196_v24 = vadd.f32 %v215_v22, %v195_v23 }
 0x2be   :  { %v243_v25 = vpop.f32.mrf.mxu1 }
 0x2bf   :  { %199 = vst [vmem:[#allocation2] sm:$0xff] %v196_v24 }
 0x2c0   :  { %260 = shalt.err (!%p257_p4)
}
 0x2c1   :  { %209 = dma.vmem_to_hbm [thread:$0]  %s207_s30, 128, %s333_s4, [#allocation3]  }
 0x2c2   :  { %269 = dma.done.wait [#allocation3], 128  }
 0x2c3   :  { %270 = vsyncadd [#allocation3], 4294967168 }
 0x2c4   :  { %213 = vsyncpa [#allocation3], 1 }

</bundles_post_ra>
